<compile_context>
chip_gen: v6e
topology: v6e:2x2x1
jax: 0.10.0
libtpu: 0.0.40
codegen_flags: <defaults>
</compile_context>

<pallas_src>
import functools

import numpy as np
import jax
import jax.numpy as jnp
from jax import lax
from jax.experimental import pallas as pl
from jax.experimental.pallas import tpu as pltpu


# ----------------------------------------------------------------------------
# Fused Pallas kernel:
#   one MXU matmul over the combined [policy | value] weights, masked
#   log-softmax over the first `num_actions` columns, in-kernel per-sample
#   action gather (lane one-hot), value picked from the fused extra column,
#   single (TB, 2) output slab = [action_log_prob | value].
# ----------------------------------------------------------------------------
def _fused_kernel(obs_ref, w_ref, b_ref, act_ref, out_ref, *, num_actions):
    obs = obs_ref[...].astype(jnp.float32)             # (TB, H)
    w = w_ref[...].astype(jnp.float32)                 # (H, A+1)  [policy | value]
    b = b_ref[...].astype(jnp.float32)                 # (1, A+1)

    logits = jnp.dot(obs, w, preferred_element_type=jnp.float32) + b  # (TB, A+1)
    tb, c = logits.shape
    col = lax.broadcasted_iota(jnp.int32, (tb, c), 1)

    # Numerically-stable log-softmax restricted to the action columns only
    # (value column / any padding masked out of the max and the sum).
    is_act_col = col < num_actions
    masked = jnp.where(is_act_col, logits, jnp.float32(-1e30))
    m = jnp.max(masked, axis=-1, keepdims=True)                         # (TB, 1)
    probs = jnp.where(is_act_col, jnp.exp(masked - m), jnp.float32(0.0))
    lse = m + jnp.log(jnp.sum(probs, axis=-1, keepdims=True))           # (TB, 1)

    # Per-sample action gather via lane one-hot (fully vectorized, no gather op).
    act = act_ref[...]                                                  # (TB, 1) int32
    picked = jnp.sum(jnp.where(col == act, logits, jnp.float32(0.0)),
                     axis=-1, keepdims=True)                            # (TB, 1)

    # Value head = fused extra column at index `num_actions`.
    value = jnp.sum(jnp.where(col == num_actions, logits, jnp.float32(0.0)),
                    axis=-1, keepdims=True)                             # (TB, 1)

    out_ref[...] = jnp.concatenate([picked - lse, value],
                                   axis=-1).astype(out_ref.dtype)       # (TB, 2)


def fused_action_log_probs_value(obs, w, b, actions, *, num_actions,
                                 block_b=512):
    """obs (B,H), w (H,A+1), b (1,A+1), actions (B,1) int32 ->
       out (B,2) float32 with columns [action_log_prob | value]."""
    B, H = obs.shape
    C = w.shape[1]
    kernel = functools.partial(_fused_kernel, num_actions=num_actions)
    out_shape = jax.ShapeDtypeStruct((B, 2), jnp.float32)

    if B <= block_b or B % block_b != 0:
        # Small / irregular batch: gridless call, whole arrays resident in VMEM.
        # No grid => no per-step pipeline prologue/epilogue overhead.
        return pl.pallas_call(
            kernel,
            out_shape=out_shape,
            in_specs=[
                pl.BlockSpec(memory_space=pltpu.MemorySpace.VMEM),  # obs
                pl.BlockSpec(memory_space=pltpu.MemorySpace.VMEM),  # w fused
                pl.BlockSpec(memory_space=pltpu.MemorySpace.VMEM),  # b fused
                pl.BlockSpec(memory_space=pltpu.MemorySpace.VMEM),  # actions
            ],
            out_specs=pl.BlockSpec(memory_space=pltpu.MemorySpace.VMEM),
        )(obs, w, b, actions)

    # Realistic DDP batch sizes: tile over B with a parallel grid axis (megacore
    # sharding on v7x), weights/bias replicated per tile (same block index every
    # step -> no re-DMA).  block_b is a multiple of 8 (f32 sublanes); H, C and
    # the 2-wide output block equal full array dims -> (8,128) rule satisfied.
    return pl.pallas_call(
        kernel,
        out_shape=out_shape,
        grid_spec=pl.GridSpec(
            grid=(B // block_b,),
            in_specs=[
                pl.BlockSpec((block_b, H), lambda i: (i, 0)),
                pl.BlockSpec((H, C), lambda i: (0, 0)),
                pl.BlockSpec((1, C), lambda i: (0, 0)),
                pl.BlockSpec((block_b, 1), lambda i: (i, 0)),
            ],
            out_specs=pl.BlockSpec((block_b, 2), lambda i: (i, 0)),
        ),
        compiler_params=pltpu.CompilerParams(
            dimension_semantics=("parallel",)),
    )(obs, w, b, actions)


def _compute_log_probs_impl(obs, w, b, actions, *, num_actions):
    obs = obs.astype(jnp.float32)
    actions = actions.reshape(-1, 1).astype(jnp.int32)
    out = fused_action_log_probs_value(obs, w, b, actions,
                                       num_actions=num_actions)
    # Free column split (fuses into the same jit).
    return out[:, 0:1], out[:, 1:2]


# ----------------------------------------------------------------------------
# Faithful ports of the wrapper-side helpers.
# ----------------------------------------------------------------------------
def _recursive_apply(inp, fn):
    if isinstance(inp, dict):
        return type(inp)(((k, _recursive_apply(v, fn)) for k, v in inp.items()))
    elif isinstance(inp, (tuple, list)):
        return type(inp)((_recursive_apply(v, fn) for v in inp))
    else:
        return fn(inp)


def _numpy_to_device(inp):
    # torch.from_numpy(t) analogue: wrap bare numpy arrays as jax arrays.
    return _recursive_apply(
        inp, lambda t: jnp.asarray(t) if isinstance(t, np.ndarray) else t)


class SyntheticActorCritic:
    """Small actor-critic whose compute_log_probs hot path is one Pallas kernel."""

    def __init__(self, hidden, num_actions, key):
        k1, k2, k3, k4 = jax.random.split(key, 4)
        self.num_actions = num_actions
        self.w_pi = jax.random.normal(k1, (hidden, num_actions), jnp.float32) * 0.1
        self.b_pi = jax.random.normal(k2, (1, num_actions), jnp.float32) * 0.1
        self.w_v = jax.random.normal(k3, (hidden, 1), jnp.float32) * 0.1
        self.b_v = jax.random.normal(k4, (1, 1), jnp.float32) * 0.1
        # Fused [policy | value] parameters, built once on the host.
        self.w_fused = jnp.concatenate([self.w_pi, self.w_v], axis=1)   # (H, A+1)
        self.b_fused = jnp.concatenate([self.b_pi, self.b_v], axis=1)   # (1, A+1)
        # Compile the whole hot path once (pallas_call + glue); num_actions static.
        self._jitted_log_probs = jax.jit(functools.partial(
            _compute_log_probs_impl, num_actions=num_actions))

    def compute_log_probs(self, obs, actions):
        return self._jitted_log_probs(obs, self.w_fused, self.b_fused, actions)


class GradFnWrapper:
    """JAX analogue of _GradFnWrapper: name-based dispatch + numpy conversion."""

    def __init__(self, actor_critic):
        self.actor_critic = actor_critic

    def forward(self, actor_critic_grad_fn_name, *args, **kwargs):
        # TODO(synk): DistributedDataParallel gradient bucketing / allreduce has
        # no Pallas equivalent here; only the forward dispatch semantics are kept.
        func = getattr(self.actor_critic, actor_critic_grad_fn_name)
        return func(*_numpy_to_device(args), **_numpy_to_device(kwargs))

    __call__ = forward


if __name__ == "__main__":
    key = jax.random.PRNGKey(0)
    k_obs, k_act, k_ac = jax.random.split(key, 3)

    B, H, A = 8, 32, 16  # batch=8, hidden=32, num_actions=16
    obs_np = np.asarray(jax.random.normal(k_obs, (B, H), jnp.float32))
    actions_np = np.asarray(
        jax.random.randint(k_act, (B,), 0, A, dtype=jnp.int32))

    actor_critic = SyntheticActorCritic(H, A, k_ac)
    wrapper = GradFnWrapper(actor_critic)

    # Mirrors DDP's forward(grad_fn_name, *numpy_args) call pattern.
    action_log_probs, value = wrapper("compute_log_probs", obs_np, actions_np)
    action_log_probs, value = jax.block_until_ready((action_log_probs, value))

    # Reference check in plain JAX (unfused heads + external gather).
    obs_j = jnp.asarray(obs_np)
    logits_ref = obs_j @ actor_critic.w_pi + actor_critic.b_pi
    logp_ref = logits_ref - jax.scipy.special.logsumexp(
        logits_ref, axis=-1, keepdims=True)
    alp_ref = jnp.take_along_axis(
        logp_ref, jnp.asarray(actions_np).reshape(-1, 1), axis=1)
    val_ref = obs_j @ actor_critic.w_v + actor_critic.b_v
    assert action_log_probs.shape == (B, 1) and value.shape == (B, 1)
    assert jnp.allclose(action_log_probs, alp_ref, atol=1e-4), "log-prob mismatch"
    assert jnp.allclose(value, val_ref, atol=1e-4), "value mismatch"

    print("KERNEL_OK")
</pallas_src>

<mosaic_0001>
module attributes {stable_mosaic.version = 11 : i64} {
  func.func @_fused_kernel(%arg0: memref<8x32xf32, #tpu.memory_space<vmem>>, %arg1: memref<32x17xf32, #tpu.memory_space<vmem>>, %arg2: memref<1x17xf32, #tpu.memory_space<vmem>>, %arg3: memref<8x1xi32, #tpu.memory_space<vmem>>, %arg4: memref<8x2xf32, #tpu.memory_space<vmem>>) attributes {dimension_semantics = [], scalar_prefetch = 0 : i64, scratch_operands = 0 : i64, tpu.core_type = #tpu.core_type<tc>} {
    %c0 = arith.constant 0 : index
    %c0_0 = arith.constant 0 : index
    %0 = vector.load %arg0[%c0, %c0_0] : memref<8x32xf32, #tpu.memory_space<vmem>>, vector<8x32xf32>
    %c0_1 = arith.constant 0 : index
    %c0_2 = arith.constant 0 : index
    %1 = vector.load %arg1[%c0_1, %c0_2] : memref<32x17xf32, #tpu.memory_space<vmem>>, vector<32x17xf32>
    %c0_3 = arith.constant 0 : index
    %c0_4 = arith.constant 0 : index
    %2 = vector.load %arg2[%c0_3, %c0_4] : memref<1x17xf32, #tpu.memory_space<vmem>>, vector<1x17xf32>
    %cst = arith.constant dense<0.000000e+00> : vector<8x17xf32>
    %3 = tpu.matmul %0, %1, %cst {dimension_numbers = #tpu.dot_dimension_numbers<[1], [0], [0], [1], [0, 0, 1, 1], [], []>} : vector<8x32xf32>, vector<32x17xf32>, vector<8x17xf32> -> vector<8x17xf32>
    %4 = vector.broadcast %2 : vector<1x17xf32> to vector<8x17xf32>
    %5 = arith.addf %3, %4 : vector<8x17xf32>
    %6 = tpu.iota {dimensions = array<i32: 1>} : vector<8x17xi32>
    %c16_i32 = arith.constant 16 : i32
    %7 = vector.broadcast %c16_i32 : i32 to vector<8x17xi32>
    %8 = arith.cmpi slt, %6, %7 : vector<8x17xi32>
    %cst_5 = arith.constant -1.000000e+30 : f32
    %9 = vector.broadcast %cst_5 : f32 to vector<8x17xf32>
    %10 = arith.select %8, %5, %9 : vector<8x17xi1>, vector<8x17xf32>
    %cst_6 = arith.constant dense<0xFF800000> : vector<8xf32>
    %11 = vector.multi_reduction <maximumf>, %10, %cst_6 [1] : vector<8x17xf32> to vector<8xf32>
    %12 = vector.shape_cast %11 : vector<8xf32> to vector<8x1xf32>
    %13 = vector.broadcast %12 : vector<8x1xf32> to vector<8x17xf32>
    %14 = arith.subf %10, %13 : vector<8x17xf32>
    %15 = math.exp %14 : vector<8x17xf32>
    %cst_7 = arith.constant 0.000000e+00 : f32
    %16 = vector.broadcast %cst_7 : f32 to vector<8x17xf32>
    %17 = arith.select %8, %15, %16 : vector<8x17xi1>, vector<8x17xf32>
    %cst_8 = arith.constant dense<0.000000e+00> : vector<8xf32>
    %18 = vector.multi_reduction <add>, %17, %cst_8 [1] : vector<8x17xf32> to vector<8xf32>
    %19 = vector.shape_cast %18 : vector<8xf32> to vector<8x1xf32>
    %20 = math.log %19 : vector<8x1xf32>
    %21 = arith.addf %12, %20 : vector<8x1xf32>
    %c0_9 = arith.constant 0 : index
    %c0_10 = arith.constant 0 : index
    %22 = vector.load %arg3[%c0_9, %c0_10] : memref<8x1xi32, #tpu.memory_space<vmem>>, vector<8x1xi32>
    %23 = vector.broadcast %22 : vector<8x1xi32> to vector<8x17xi32>
    %24 = arith.cmpi eq, %6, %23 : vector<8x17xi32>
    %cst_11 = arith.constant 0.000000e+00 : f32
    %25 = vector.broadcast %cst_11 : f32 to vector<8x17xf32>
    %26 = arith.select %24, %5, %25 : vector<8x17xi1>, vector<8x17xf32>
    %cst_12 = arith.constant dense<0.000000e+00> : vector<8xf32>
    %27 = vector.multi_reduction <add>, %26, %cst_12 [1] : vector<8x17xf32> to vector<8xf32>
    %28 = vector.shape_cast %27 : vector<8xf32> to vector<8x1xf32>
    %c16_i32_13 = arith.constant 16 : i32
    %29 = vector.broadcast %c16_i32_13 : i32 to vector<8x17xi32>
    %30 = arith.cmpi eq, %6, %29 : vector<8x17xi32>
    %cst_14 = arith.constant 0.000000e+00 : f32
    %31 = vector.broadcast %cst_14 : f32 to vector<8x17xf32>
    %32 = arith.select %30, %5, %31 : vector<8x17xi1>, vector<8x17xf32>
    %cst_15 = arith.constant dense<0.000000e+00> : vector<8xf32>
    %33 = vector.multi_reduction <add>, %32, %cst_15 [1] : vector<8x17xf32> to vector<8xf32>
    %34 = vector.shape_cast %33 : vector<8xf32> to vector<8x1xf32>
    %35 = arith.subf %28, %21 : vector<8x1xf32>
    %36 = tpu.concatenate %35, %34 in 1 : vector<8x1xf32>, vector<8x1xf32> -> vector<8x2xf32>
    %c0_16 = arith.constant 0 : index
    %c0_17 = arith.constant 0 : index
    %37 = vector.load %arg4[%c0_16, %c0_17] : memref<8x2xf32, #tpu.memory_space<vmem>>, vector<8x2xf32>
    tpu.vector_store %arg4[%c0_16, %c0_17], %36 {strides = array<i32>} : memref<8x2xf32, #tpu.memory_space<vmem>>, vector<8x2xf32>,
    return
  }
}

</mosaic_0001>

<bundles_post_ra>
// kernel: _compute_log_probs_impl.1
= control target key start
LH: loop header
LB: loop body
LE: loop exit
PB: predicated region body
PF: predicated region fallthrough
CT: control target
= control target key end

     0   :  { %v170_v0 = vmov 0.0   ;;  %vm171_vm0 = vmmov 0   ;;  %vm29_vm1 = vcmask 261120   ;;  %v172_v6 = vmov 0   ;;  %s228_s1 = inlined_call_operand.vmem [shape: f32[32,17], index: 1, kind: input, shape index: {}]   ;;  %s229_s0 = inlined_call_operand.vmem [shape: f32[8,32], index: 0, kind: input, shape index: {}]   ;;  %s230_s2 = inlined_call_operand.vmem [shape: f32[1,17], index: 2, kind: input, shape index: {}]   ;;  %s231_s3 = inlined_call_operand.vmem [shape: s32[8,1], index: 3, kind: input, shape index: {}]   ;;  %s232_s4 = inlined_call_operand.vmem [shape: f32[8,2], index: 4, kind: output, shape index: {}]  }
   0x1   :  { %151 = vmatprep.subr.mxu0 %v170_v0  ;;  %v21_v1 = vld [vmem:[%s228_s1 + $0x18] sm:$0xff]  ;;  %v20_v2 = vld [vmem:[%s228_s1 + $0x10] sm:$0xff]  ;;  %159 = vmatprep.mubr.msk.f32.mxu0 %vm171_vm0, %v170_v0  ;;  %v19_v3 = vld [vmem:[%s228_s1 + $0x8] sm:$0xff]  ;;  %v103_v7 = vlaneseq  ;;  %vm107_vm3 = vcmask 138240   ;;  %vm136_vm6 = vcmask 7168   ;;  %vm138_vm7 = vcmask 15360  }
   0x2   :  { %152 = vmatpush3.msra.mxu0 %v21_v1  ;;  %v18_v4 = vld [vmem:[%s228_s1] sm:$0xff]  ;;  %165 = vset.pattern.permute.xlu0 %v172_v6 }
   0x3   :  { %153 = vmatprep.subr.mxu0 %v170_v0  ;;  %v17_v5 = vld [vmem:[%s229_s0] sm:$0xff]  ;;  %v104_v8 = vand.u32 127, %v103_v7 }
   0x4   :  { %154 = vmatpush3.msra.mxu0 %v20_v2  ;;  %v144_v9 = vld [vmem:[%s230_s2] ss:$0 sm:$0xff] }
   0x5   :  { %155 = vmatprep.subr.mxu0 %v170_v0  ;;  %vm105_vm2 = vcmp.lt.s32.totalorder %v104_v8, 16  ;;  %v121_v15 = vld [vmem:[%s231_s3] sm:$0xff]  ;;  %vm130_vm5 = vcmp.eq.s32.totalorder %v104_v8, 16 }
   0x6   :  { %156 = vmatpush3.msra.mxu0 %v19_v3 }
   0x7   :  { %157 = vmatprep.subr.mxu0 %v170_v0 }
   0x8   :  { %158 = vmatpush3.msra.mxu0 %v18_v4 }
   0x9   :  { %160 = vmatmul.mubr.msk.f32.vlgmr.msra.gmra.mxu0 %vm29_vm1, %v17_v5 }
  0xc9   :  { %v99_v10 = vpop.f32.mrf.mxu0 }
  0xca   :  { %v100_v11 = vadd.f32 %v144_v9, %v99_v10 }
  0xcb   :  { %v161_v12 = vpop.f32.mrf.mxu0 }
  0xcc   :  { %v106_v13 = vsel %vm105_vm2, %v100_v11, -1e+30  ;;  %v131_v25 = vsel %vm130_vm5, %v100_v11, 0.0 }
  0xcd   :  { %v108_v14 = vsel %vm107_vm3, %v106_v13, -inf  ;;  %v132_v26 = vsel %vm107_vm3, %v131_v25, 0.0 }
  0xce   :  { %109 = vmax.xlane.f32.xlu0 %v108_v14 }
  0xe4   :  { %123 = vperm.xlu0 %165, %v121_v15  }
 0x157   :  { %v110_v16 = vpop.xlane.xlu0 %109 }
 0x158   :  { %v111_v17 = vsub.f32 %v106_v13, %v110_v16 }
 0x15a   :  { %v112_v18 = vmul.f32 1.442695, %v111_v17 }
 0x15c   :  { %166 = vpow2.f32 %v112_v18 }
 0x15f   :  { %v124_v19 = vpop.permute.xlu0 %123 }
 0x160   :  { %vm125_vm4 = vcmp.eq.s32.totalorder %v104_v8, %v124_v19 }
 0x161   :  { %v126_v23 = vsel %vm125_vm4, %v100_v11, 0.0 }
 0x162   :  { %v127_v24 = vsel %vm107_vm3, %v126_v23, 0.0 }
 0x169   :  { %v167_v20 = vpop.eup %166 }
 0x16a   :  { %v114_v21 = vsel %vm105_vm2, %v167_v20, 0.0 }
 0x16b   :  { %v115_v22 = vsel %vm107_vm3, %v114_v21, 0.0 }
 0x16c   :  { %116 = vadd.xlane.f32.xlu1 %v115_v22 }
 0x170   :  { %128 = vadd.xlane.f32.xlu1 %v127_v24 }
 0x174   :  { %133 = vadd.xlane.f32.xlu1 %v132_v26 }
 0x1f5   :  { %v117_v27 = vpop.xlane.xlu1 %116 }
 0x1f6   :  { %168 = vlog2.f32 %v117_v27 }
 0x1f9   :  { %v129_v29 = vpop.xlane.xlu1 %128 }
 0x1fd   :  { %v134_v33 = vpop.xlane.xlu1 %133 }
 0x203   :  { %v169_v28 = vpop.eup %168 }
 0x204   :  { %v119_v30 = vmul.f32 0.6931472, %v169_v28 }
 0x206   :  { %v120_v31 = vadd.f32 %v119_v30, %v110_v16 }
 0x208   :  { %v135_v32 = vsub.f32 %v129_v29, %v120_v31 }
 0x20a   :  { %v137_v34 = vsel %vm136_vm6, %v135_v32, %v134_v33 }
 0x20b   :  { %139 = vst.msk [vmem:[%s232_s4] sm:$0xff] %vm138_vm7, %v137_v34 }

</bundles_post_ra>
